<compile_context>
chip_gen: v5e
topology: v5e:2x2
jax: 0.10.0
libtpu: 0.0.40
codegen_flags: <defaults>
</compile_context>

<pallas_src>
import functools

import jax
import jax.numpy as jnp
from jax.experimental import pallas as pl
from jax.experimental.pallas import tpu as pltpu

_SUBLANE = 8     # f32 sublane count
_LANE = 128      # lane width


def _round_up(n, m):
    return ((n + m - 1) // m) * m


# ----------------------------------------------------------------------------
# Pallas kernel: fused  y = relu(x @ W1 + b1) @ W2 + b2   (single invocation)
# ----------------------------------------------------------------------------
def _fused_mlp_kernel(x_ref, w1_ref, b1_ref, w2_ref, b2_ref, o_ref):
    # x: (Bp, Fin) f32, w1: (Fin, H) bf16, b1: (1, H) f32,
    # w2: (H, Op) bf16, b2: (1, Op) f32, o: (Bp, Op) f32   (Op = OUT padded to 128)
    x = x_ref[...].astype(jnp.bfloat16)
    h = jnp.dot(x, w1_ref[...], preferred_element_type=jnp.float32)
    h = jnp.maximum(h + b1_ref[...], 0.0)                 # bias + ReLU in f32
    out = jnp.dot(h.astype(jnp.bfloat16), w2_ref[...],
                  preferred_element_type=jnp.float32)
    o_ref[...] = out + b2_ref[...]                        # lane-dense f32 store


def fused_mlp(x_flat, w1, b1, w2, b2):
    """Single pallas_call over the whole (tiny) problem: no grid, no pipelining."""
    B, _ = x_flat.shape
    out_pad = w2.shape[1]
    b_pad = _round_up(max(B, _SUBLANE), _SUBLANE)
    x_pad = jnp.pad(x_flat, ((0, b_pad - B), (0, 0)))
    vmem = pl.BlockSpec(memory_space=pltpu.MemorySpace.VMEM)
    y_pad = pl.pallas_call(
        _fused_mlp_kernel,
        out_shape=jax.ShapeDtypeStruct((b_pad, out_pad), jnp.float32),
        in_specs=[vmem] * 5,
        out_specs=vmem,
    )(x_pad, w1, b1, w2, b2)
    return y_pad  # caller slices rows/lanes back


# ----------------------------------------------------------------------------
# Concrete AbstractModel instantiation (sequential layer composition)
# ----------------------------------------------------------------------------
class AbstractModelPallas:
    def __init__(self, name, in_features, hidden, out_features, key):
        self.name = name
        self.out_features = out_features
        k1, k2, k3, k4 = jax.random.split(key, 4)
        # Deterministic synthetic parameters (PyTorch-Linear-like scale).
        s1 = 1.0 / float(jnp.sqrt(in_features))
        s2 = 1.0 / float(jnp.sqrt(hidden))
        w1 = jax.random.uniform(k1, (in_features, hidden), jnp.float32, -s1, s1)
        b1 = jax.random.uniform(k2, (1, hidden), jnp.float32, -s1, s1)
        w2 = jax.random.uniform(k3, (hidden, out_features), jnp.float32, -s2, s2)
        b2 = jax.random.uniform(k4, (1, out_features), jnp.float32, -s2, s2)

        out_pad = _round_up(out_features, _LANE)
        # bf16 weights (f32 accumulate inside the kernel); last layer lane-padded.
        self.w1 = w1.astype(jnp.bfloat16)
        self.b1 = b1
        self.w2 = jnp.pad(w2, ((0, 0), (0, out_pad - out_features))).astype(jnp.bfloat16)
        self.b2 = jnp.pad(b2, ((0, 0), (0, out_pad - out_features)))

        # self.layers mirrors AbstractModel's sequential layer list; the two
        # Linear(+ReLU) stages are fused into ONE Pallas kernel, hence one entry.
        self.layers = [self._fused_layers]
        self._jitted_forward = jax.jit(self._forward_impl)

    def _fused_layers(self, x_flat):
        return fused_mlp(x_flat, self.w1, self.b1, self.w2, self.b2)

    def _forward_impl(self, x):
        # NCHW -> (B, C*H*W), same as torch.flatten(x, 1) row-major.
        B = x.shape[0]
        out = x.reshape(B, -1)
        for layer in self.layers:          # identical control flow to PyTorch
            out = layer(out)
        # Strip row (batch) and lane (OUT) padding added for the TPU kernel.
        return out[:B, : self.out_features]

    def forward(self, x):
        return self._jitted_forward(x)

    __call__ = forward

    # TODO(synk): binarize / set_weights / genetic_* / generate_population /
    # train_and_save are host-side genetic-training utilities over layer
    # populations; they have no forward-pass Pallas equivalent and are omitted.


# ----------------------------------------------------------------------------
if __name__ == "__main__":
    key = jax.random.PRNGKey(0)
    k_x, k_p = jax.random.split(key)

    B, C, H, W = 2, 4, 16, 16          # NCHW input, as the training loop implies
    HIDDEN, OUT = 128, 8

    x = jax.random.normal(k_x, (B, C, H, W), jnp.float32)

    model = AbstractModelPallas("genetic_mlp", C * H * W, HIDDEN, OUT, k_p)
    y = jax.block_until_ready(model(x))

    assert y.shape == (B, OUT) and y.dtype == jnp.float32

    # Plain-JAX reference of the same forward pass (same bf16 weights, f32 acc).
    xf = x.reshape(B, -1).astype(jnp.bfloat16)
    h_ref = jnp.dot(xf, model.w1, preferred_element_type=jnp.float32) + model.b1
    h_ref = jnp.maximum(h_ref, 0.0).astype(jnp.bfloat16)
    y_ref = jnp.dot(h_ref, model.w2, preferred_element_type=jnp.float32) + model.b2
    y_ref = y_ref[:, :OUT]
    assert jnp.allclose(y, y_ref, rtol=2e-2, atol=2e-2), (
        f"max abs err {float(jnp.max(jnp.abs(y - y_ref)))}")

    print("KERNEL_OK")
</pallas_src>

<mosaic_0001>
module attributes {stable_mosaic.version = 11 : i64} {
  func.func @_fused_mlp_kernel(%arg0: memref<8x1024xf32, #tpu.memory_space<vmem>>, %arg1: memref<1024x128xbf16, #tpu.memory_space<vmem>>, %arg2: memref<1x128xf32, #tpu.memory_space<vmem>>, %arg3: memref<128x128xbf16, #tpu.memory_space<vmem>>, %arg4: memref<1x128xf32, #tpu.memory_space<vmem>>, %arg5: memref<8x128xf32, #tpu.memory_space<vmem>>) attributes {dimension_semantics = [], scalar_prefetch = 0 : i64, scratch_operands = 0 : i64, tpu.core_type = #tpu.core_type<tc>} {
    %c0 = arith.constant 0 : index
    %c0_0 = arith.constant 0 : index
    %0 = vector.load %arg0[%c0, %c0_0] : memref<8x1024xf32, #tpu.memory_space<vmem>>, vector<8x1024xf32>
    %1 = arith.truncf %0 : vector<8x1024xf32> to vector<8x1024xbf16>
    %c0_1 = arith.constant 0 : index
    %c0_2 = arith.constant 0 : index
    %2 = vector.load %arg1[%c0_1, %c0_2] : memref<1024x128xbf16, #tpu.memory_space<vmem>>, vector<1024x128xbf16>
    %cst = arith.constant dense<0.000000e+00> : vector<8x128xf32>
    %3 = tpu.matmul %1, %2, %cst {dimension_numbers = #tpu.dot_dimension_numbers<[1], [0], [0], [1], [0, 0, 1, 1], [], []>} : vector<8x1024xbf16>, vector<1024x128xbf16>, vector<8x128xf32> -> vector<8x128xf32>
    %c0_3 = arith.constant 0 : index
    %c0_4 = arith.constant 0 : index
    %4 = vector.load %arg2[%c0_3, %c0_4] : memref<1x128xf32, #tpu.memory_space<vmem>>, vector<1x128xf32>
    %5 = vector.broadcast %4 : vector<1x128xf32> to vector<8x128xf32>
    %6 = arith.addf %3, %5 : vector<8x128xf32>
    %cst_5 = arith.constant 0.000000e+00 : f32
    %7 = vector.broadcast %cst_5 : f32 to vector<8x128xf32>
    %8 = arith.maximumf %6, %7 : vector<8x128xf32>
    %9 = arith.truncf %8 : vector<8x128xf32> to vector<8x128xbf16>
    %c0_6 = arith.constant 0 : index
    %c0_7 = arith.constant 0 : index
    %10 = vector.load %arg3[%c0_6, %c0_7] : memref<128x128xbf16, #tpu.memory_space<vmem>>, vector<128x128xbf16>
    %cst_8 = arith.constant dense<0.000000e+00> : vector<8x128xf32>
    %11 = tpu.matmul %9, %10, %cst_8 {dimension_numbers = #tpu.dot_dimension_numbers<[1], [0], [0], [1], [0, 0, 1, 1], [], []>} : vector<8x128xbf16>, vector<128x128xbf16>, vector<8x128xf32> -> vector<8x128xf32>
    %c0_9 = arith.constant 0 : index
    %c0_10 = arith.constant 0 : index
    %12 = vector.load %arg4[%c0_9, %c0_10] : memref<1x128xf32, #tpu.memory_space<vmem>>, vector<1x128xf32>
    %13 = vector.broadcast %12 : vector<1x128xf32> to vector<8x128xf32>
    %14 = arith.addf %11, %13 : vector<8x128xf32>
    %c0_11 = arith.constant 0 : index
    %c0_12 = arith.constant 0 : index
    %15 = vector.load %arg5[%c0_11, %c0_12] : memref<8x128xf32, #tpu.memory_space<vmem>>, vector<8x128xf32>
    tpu.vector_store %arg5[%c0_11, %c0_12], %14 {strides = array<i32>} : memref<8x128xf32, #tpu.memory_space<vmem>>, vector<8x128xf32>,
    return
  }
}

</mosaic_0001>

<bundles_post_ra>
// kernel: _forward_impl.1
= control target key start
LH: loop header
LB: loop body
LE: loop exit
PB: predicated region body
PF: predicated region fallthrough
CT: control target
= control target key end

     0   :  { %10 = vsyncpa [#allocation3], 0  ;;  %s1152_s21 = smov [#allocation2]   ;;  %s1153_s23 = smov 64   ;;  %s1245_s0 = inlined_call_operand.vmem [shape: f32[8,1024], index: 0, kind: input, shape index: {}]   ;;  %s1246_s1 = inlined_call_operand.hbm [shape: bf16[1024,128], index: 1, kind: input, shape index: {}]   ;;  %s1247_s2 = inlined_call_operand.vmem [shape: f32[1,128], index: 2, kind: input, shape index: {}]   ;;  %s1248_s3 = inlined_call_operand.vmem [shape: bf16[128,128], index: 3, kind: input, shape index: {}]   ;;  %s1249_s4 = inlined_call_operand.vmem [shape: f32[1,128], index: 4, kind: input, shape index: {}]   ;;  %s1250_s5 = inlined_call_operand.vmem [shape: f32[8,128], index: 5, kind: output, shape index: {}]  }
   0x1   :  { %s17_s20 = sshll.u32 %s1246_s1, 4  ;;  %s19_s22 = sshll.u32 %s1152_s21, 4  ;;  %s18_s20 = int_to_ptr.hbm [resolvable:$true] %s17_s20  ;;  %s20_s22 = int_to_ptr.vmem [resolvable:$true] %s19_s22 }
   0x2   :  { %s1154_s24 = smov 4  }
   0x3   :  { %25 = dma.hbm_to_vmem [thread:$0]  %s18_s20, 8192, %s20_s22, [#allocation3], %s1153_s23, %s1153_s23, %s1154_s24  }
   0x4   :  { %1150 = dma.done.wait [#allocation3], 8192  }
   0x5   :  { %1151 = vsyncadd [#allocation3], 4294959104  ;;  %v1056_v0 = vld [vmem:[#allocation2 + $0x38] sm:$0xff]  ;;  %v1055_v4 = vld [vmem:[#allocation2 + $0x30] sm:$0xff] }
   0x6   :  { %v1064_v1 = vld [vmem:[#allocation2 + $0x78] sm:$0xff]  ;;  %568 = vmatpush.bf16.msra.mxu0 %v1056_v0  ;;  %v1063_v5 = vld [vmem:[#allocation2 + $0x70] sm:$0xff]  ;;  %v1054_v8 = vld [vmem:[#allocation2 + $0x28] sm:$0xff] }
   0x7   :  { %v1072_v2 = vld [vmem:[#allocation2 + $0xb8] sm:$0xff]  ;;  %581 = vmatpush.bf16.msra.mxu1 %v1064_v1  ;;  %v1071_v6 = vld [vmem:[#allocation2 + $0xb0] sm:$0xff]  ;;  %v1062_v9 = vld [vmem:[#allocation2 + $0x68] sm:$0xff] }
   0x8   :  { %v1080_v3 = vld [vmem:[#allocation2 + $0xf8] sm:$0xff]  ;;  %594 = vmatpush.bf16.msra.mxu2 %v1072_v2  ;;  %v1079_v7 = vld [vmem:[#allocation2 + $0xf0] sm:$0xff]  ;;  %v1070_v10 = vld [vmem:[#allocation2 + $0xa8] sm:$0xff] }
   0x9   :  { %607 = vmatpush.bf16.msra.mxu3 %v1080_v3  ;;  %v1078_v11 = vld [vmem:[#allocation2 + $0xe8] sm:$0xff]  ;;  %v1053_v12 = vld [vmem:[#allocation2 + $0x20] sm:$0xff]  ;;  %v1052_v16 = vld [vmem:[#allocation2 + $0x18] sm:$0xff] }
   0xa   :  { %569 = vmatpush.bf16.msra.mxu0 %v1055_v4  ;;  %v1061_v13 = vld [vmem:[#allocation2 + $0x60] sm:$0xff]  ;;  %v1060_v17 = vld [vmem:[#allocation2 + $0x58] sm:$0xff]  ;;  %v1051_v20 = vld [vmem:[#allocation2 + $0x10] sm:$0xff] }
   0xb   :  { %582 = vmatpush.bf16.msra.mxu1 %v1063_v5  ;;  %v1069_v14 = vld [vmem:[#allocation2 + $0xa0] sm:$0xff]  ;;  %v1068_v18 = vld [vmem:[#allocation2 + $0x98] sm:$0xff]  ;;  %v1059_v21 = vld [vmem:[#allocation2 + $0x50] sm:$0xff] }
   0xc   :  { %595 = vmatpush.bf16.msra.mxu2 %v1071_v6  ;;  %v1077_v15 = vld [vmem:[#allocation2 + $0xe0] sm:$0xff]  ;;  %v1076_v19 = vld [vmem:[#allocation2 + $0xd8] sm:$0xff]  ;;  %v1067_v22 = vld [vmem:[#allocation2 + $0x90] sm:$0xff] }
   0xd   :  { %608 = vmatpush.bf16.msra.mxu3 %v1079_v7  ;;  %v1075_v23 = vld [vmem:[#allocation2 + $0xd0] sm:$0xff]  ;;  %v1050_v24 = vld [vmem:[#allocation2 + $0x8] sm:$0xff]  ;;  %v1049_v28 = vld [vmem:[#allocation2] sm:$0xff] }
   0xe   :  { %570 = vmatpush.bf16.msra.mxu0 %v1054_v8  ;;  %v1058_v25 = vld [vmem:[#allocation2 + $0x48] sm:$0xff]  ;;  %v1057_v29 = vld [vmem:[#allocation2 + $0x40] sm:$0xff]  ;;  %v1088_v32 = vld [vmem:[#allocation2 + $0x138] sm:$0xff] }
   0xf   :  { %583 = vmatpush.bf16.msra.mxu1 %v1062_v9  ;;  %v1066_v26 = vld [vmem:[#allocation2 + $0x88] sm:$0xff]  ;;  %v1065_v30 = vld [vmem:[#allocation2 + $0x80] sm:$0xff]  ;;  %v38_v33 = vld [vmem:[%s1245_s0 + $0x10] sm:$0xff] }
  0x10   :  { %596 = vmatpush.bf16.msra.mxu2 %v1070_v10  ;;  %v1074_v27 = vld [vmem:[#allocation2 + $0xc8] sm:$0xff]  ;;  %v1073_v31 = vld [vmem:[#allocation2 + $0xc0] sm:$0xff]  ;;  %v1096_v35 = vld [vmem:[#allocation2 + $0x178] sm:$0xff]  ;;  %v46_v40 = vpack.c.bf16 %v38_v33, %v38_v33 }
  0x11   :  { %609 = vmatpush.bf16.msra.mxu3 %v1078_v11  ;;  %v36_v34 = vld [vmem:[%s1245_s0] sm:$0xff]  ;;  %v39_v36 = vld [vmem:[%s1245_s0 + $0x18] sm:$0xff]  ;;  %v37_v37 = vld [vmem:[%s1245_s0 + $0x8] sm:$0xff] }
  0x12   :  { %571 = vmatpush.bf16.msra.mxu0 %v1053_v12  ;;  %v1104_v38 = vld [vmem:[#allocation2 + $0x1b8] sm:$0xff]  ;;  %v44_v41 = vpack.c.bf16 %v36_v34, %v36_v34  ;;  %v47_v42 = vpack.c.bf16 %v39_v36, %v39_v36  ;;  %v45_v43 = vpack.c.bf16 %v37_v37, %v37_v37  ;;  %v1087_v44 = vld [vmem:[#allocation2 + $0x130] sm:$0xff]  ;;  %v1086_v48 = vld [vmem:[#allocation2 + $0x128] sm:$0xff] }
  0x13   :  { %584 = vmatpush.bf16.msra.mxu1 %v1061_v13  ;;  %v1112_v39 = vld [vmem:[#allocation2 + $0x1f8] sm:$0xff]  ;;  %v1095_v45 = vld [vmem:[#allocation2 + $0x170] sm:$0xff]  ;;  %v1094_v49 = vld [vmem:[#allocation2 + $0x168] sm:$0xff] }
  0x14   :  { %597 = vmatpush.bf16.msra.mxu2 %v1069_v14  ;;  %v1103_v46 = vld [vmem:[#allocation2 + $0x1b0] sm:$0xff]  ;;  %v1102_v50 = vld [vmem:[#allocation2 + $0x1a8] sm:$0xff]  ;;  %v1085_v52 = vld [vmem:[#allocation2 + $0x120] sm:$0xff] }
  0x15   :  { %610 = vmatpush.bf16.msra.mxu3 %v1077_v15  ;;  %v1111_v47 = vld [vmem:[#allocation2 + $0x1f0] sm:$0xff]  ;;  %v1110_v51 = vld [vmem:[#allocation2 + $0x1e8] sm:$0xff]  ;;  %v1093_v53 = vld [vmem:[#allocation2 + $0x160] sm:$0xff] }
  0x16   :  { %572 = vmatpush.bf16.msra.mxu0 %v1052_v16  ;;  %v1101_v54 = vld [vmem:[#allocation2 + $0x1a0] sm:$0xff]  ;;  %v1084_v56 = vld [vmem:[#allocation2 + $0x118] sm:$0xff]  ;;  %v1083_v60 = vld [vmem:[#allocation2 + $0x110] sm:$0xff] }
  0x17   :  { %585 = vmatpush.bf16.msra.mxu1 %v1060_v17  ;;  %v1109_v55 = vld [vmem:[#allocation2 + $0x1e0] sm:$0xff]  ;;  %v1092_v57 = vld [vmem:[#allocation2 + $0x158] sm:$0xff]  ;;  %v1091_v61 = vld [vmem:[#allocation2 + $0x150] sm:$0xff] }
  0x18   :  { %598 = vmatpush.bf16.msra.mxu2 %v1068_v18  ;;  %v1100_v58 = vld [vmem:[#allocation2 + $0x198] sm:$0xff]  ;;  %v1099_v62 = vld [vmem:[#allocation2 + $0x190] sm:$0xff]  ;;  %v1082_v0 = vld [vmem:[#allocation2 + $0x108] sm:$0xff] }
  0x19   :  { %611 = vmatpush.bf16.msra.mxu3 %v1076_v19  ;;  %v1108_v59 = vld [vmem:[#allocation2 + $0x1d8] sm:$0xff]  ;;  %v1107_v63 = vld [vmem:[#allocation2 + $0x1d0] sm:$0xff]  ;;  %v1090_v1 = vld [vmem:[#allocation2 + $0x148] sm:$0xff] }
  0x1a   :  { %573 = vmatpush.bf16.msra.mxu0 %v1051_v20  ;;  %v1098_v2 = vld [vmem:[#allocation2 + $0x188] sm:$0xff]  ;;  %v1081_v4 = vld [vmem:[#allocation2 + $0x100] sm:$0xff]  ;;  %v42_v10 = vld [vmem:[%s1245_s0 + $0x30] sm:$0xff] }
  0x1b   :  { %586 = vmatpush.bf16.msra.mxu1 %v1059_v21  ;;  %v1106_v3 = vld [vmem:[#allocation2 + $0x1c8] sm:$0xff]  ;;  %v1089_v5 = vld [vmem:[#allocation2 + $0x140] sm:$0xff]  ;;  %v43_v11 = vld [vmem:[%s1245_s0 + $0x38] sm:$0xff]  ;;  %v50_v14 = vpack.c.bf16 %v42_v10, %v42_v10 }
  0x1c   :  { %599 = vmatpush.bf16.msra.mxu2 %v1067_v22  ;;  %v1097_v6 = vld [vmem:[#allocation2 + $0x180] sm:$0xff]  ;;  %v41_v8 = vld [vmem:[%s1245_s0 + $0x28] sm:$0xff]  ;;  %v51_v15 = vpack.c.bf16 %v43_v11, %v43_v11  ;;  %v1120_v16 = vld [vmem:[%s1248_s3 + $0x38] sm:$0xff] }
  0x1d   :  { %612 = vmatpush.bf16.msra.mxu3 %v1075_v23  ;;  %v40_v7 = vld [vmem:[%s1245_s0 + $0x20] sm:$0xff]  ;;  %v49_v13 = vpack.c.bf16 %v41_v8, %v41_v8  ;;  %v1119_v17 = vld [vmem:[%s1248_s3 + $0x30] sm:$0xff]  ;;  %v1118_v18 = vld [vmem:[%s1248_s3 + $0x28] sm:$0xff] }
  0x1e   :  { %574 = vmatpush.bf16.msra.mxu0 %v1050_v24  ;;  %v1105_v9 = vld [vmem:[#allocation2 + $0x1c0] sm:$0xff]  ;;  %v48_v12 = vpack.c.bf16 %v40_v7, %v40_v7  ;;  %v1116_v20 = vld [vmem:[%s1248_s3 + $0x18] sm:$0xff]  ;;  %v1115_v22 = vld [vmem:[%s1248_s3 + $0x10] sm:$0xff] }
  0x1f   :  { %587 = vmatpush.bf16.msra.mxu1 %v1058_v25  ;;  %v1117_v19 = vld [vmem:[%s1248_s3 + $0x20] sm:$0xff]  ;;  %v1114_v24 = vld [vmem:[%s1248_s3 + $0x8] sm:$0xff] }
  0x20   :  { %600 = vmatpush.bf16.msra.mxu2 %v1066_v26 }
  0x21   :  { %613 = vmatpush.bf16.msra.mxu3 %v1074_v27 }
  0x22   :  { %575 = vmatpush.bf16.msra.mxu0 %v1049_v28  ;;  %v1113_v28 = vld [vmem:[%s1248_s3] sm:$0xff] }
  0x23   :  { %588 = vmatpush.bf16.msra.mxu1 %v1057_v29 }
  0x24   :  { %601 = vmatpush.bf16.msra.mxu2 %v1065_v30  ;;  %v1124_v30 = vld [vmem:[%s1247_s2] ss:$0 sm:$0xff] }
  0x25   :  { %614 = vmatpush.bf16.msra.mxu3 %v1073_v31  ;;  %576 = vmatmul.bf16.vlgmr.msra.gmra.mxu0 %v44_v41 }
  0x26   :  { %620 = vmatpush.bf16.msrb.mxu0 %v1088_v32  ;;  %589 = vmatmul.bf16.vlgmr.msra.gmra.mxu1 %v45_v43 }
  0x27   :  { %633 = vmatpush.bf16.msrb.mxu1 %v1096_v35  ;;  %602 = vmatmul.bf16.vlgmr.msra.gmra.mxu2 %v46_v40 }
  0x28   :  { %646 = vmatpush.bf16.msrb.mxu2 %v1104_v38  ;;  %615 = vmatmul.bf16.vlgmr.msra.gmra.mxu3 %v47_v42 }
  0x29   :  { %659 = vmatpush.bf16.msrb.mxu3 %v1112_v39 }
  0x2a   :  { %621 = vmatpush.bf16.msrb.mxu0 %v1087_v44 }
  0x2b   :  { %634 = vmatpush.bf16.msrb.mxu1 %v1095_v45 }
  0x2c   :  { %647 = vmatpush.bf16.msrb.mxu2 %v1103_v46 }
  0x2d   :  { %660 = vmatpush.bf16.msrb.mxu3 %v1111_v47 }
  0x2e   :  { %622 = vmatpush.bf16.msrb.mxu0 %v1086_v48 }
  0x2f   :  { %635 = vmatpush.bf16.msrb.mxu1 %v1094_v49 }
  0x30   :  { %648 = vmatpush.bf16.msrb.mxu2 %v1102_v50 }
  0x31   :  { %661 = vmatpush.bf16.msrb.mxu3 %v1110_v51  ;;  %v1125_v51 = vld [vmem:[%s1249_s4] ss:$0 sm:$0xff] }
  0x32   :  { %623 = vmatpush.bf16.msrb.mxu0 %v1085_v52 }
  0x33   :  { %636 = vmatpush.bf16.msrb.mxu1 %v1093_v53 }
  0x34   :  { %649 = vmatpush.bf16.msrb.mxu2 %v1101_v54 }
  0x35   :  { %662 = vmatpush.bf16.msrb.mxu3 %v1109_v55 }
  0x36   :  { %624 = vmatpush.bf16.msrb.mxu0 %v1084_v56 }
  0x37   :  { %637 = vmatpush.bf16.msrb.mxu1 %v1092_v57 }
  0x38   :  { %650 = vmatpush.bf16.msrb.mxu2 %v1100_v58 }
  0x39   :  { %663 = vmatpush.bf16.msrb.mxu3 %v1108_v59 }
  0x3a   :  { %625 = vmatpush.bf16.msrb.mxu0 %v1083_v60 }
  0x3b   :  { %638 = vmatpush.bf16.msrb.mxu1 %v1091_v61 }
  0x3c   :  { %651 = vmatpush.bf16.msrb.mxu2 %v1099_v62 }
  0x3d   :  { %664 = vmatpush.bf16.msrb.mxu3 %v1107_v63 }
  0x3e   :  { %626 = vmatpush.bf16.msrb.mxu0 %v1082_v0 }
  0x3f   :  { %639 = vmatpush.bf16.msrb.mxu1 %v1090_v1 }
  0x40   :  { %652 = vmatpush.bf16.msrb.mxu2 %v1098_v2 }
  0x41   :  { %665 = vmatpush.bf16.msrb.mxu3 %v1106_v3 }
  0x42   :  { %627 = vmatpush.bf16.msrb.mxu0 %v1081_v4 }
  0x43   :  { %640 = vmatpush.bf16.msrb.mxu1 %v1089_v5 }
  0x44   :  { %653 = vmatpush.bf16.msrb.mxu2 %v1097_v6 }
  0x45   :  { %666 = vmatpush.bf16.msrb.mxu3 %v1105_v9  ;;  %628 = vmatmul.bf16.vlgmr.msrb.gmra.mxu0 %v48_v12 }
  0x46   :  { %641 = vmatmul.bf16.vlgmr.msrb.gmra.mxu1 %v49_v13  ;;  %742 = vmatpush.bf16.msra.mxu0 %v1120_v16 }
  0x47   :  { %654 = vmatmul.bf16.vlgmr.msrb.gmra.mxu2 %v50_v14 }
  0x48   :  { %667 = vmatmul.bf16.vlgmr.msrb.gmra.mxu3 %v51_v15 }
  0x4a   :  { %743 = vmatpush.bf16.msra.mxu0 %v1119_v17 }
  0x4e   :  { %744 = vmatpush.bf16.msra.mxu0 %v1118_v18 }
  0x52   :  { %745 = vmatpush.bf16.msra.mxu0 %v1117_v19 }
  0x56   :  { %746 = vmatpush.bf16.msra.mxu0 %v1116_v20 }
  0x5a   :  { %747 = vmatpush.bf16.msra.mxu0 %v1115_v22 }
  0x5e   :  { %748 = vmatpush.bf16.msra.mxu0 %v1114_v24 }
  0x62   :  { %749 = vmatpush.bf16.msra.mxu0 %v1113_v28 }
  0xa2   :  { %v577_v21 = vpop.f32.mrf.mxu0 }
  0xa3   :  { %v590_v23 = vpop.f32.mrf.mxu1  ;;  %v578_v33 = vadd.f32 %v1124_v30, %v577_v21 }
  0xa5   :  { %v591_v34 = vadd.f32 %v590_v23, %v578_v33 }
  0xaa   :  { %v603_v25 = vpop.f32.mrf.mxu2  ;;  %v579_v27 = vpop.f32.mrf.mxu0 }
  0xab   :  { %v616_v26 = vpop.f32.mrf.mxu3  ;;  %v592_v29 = vpop.f32.mrf.mxu1  ;;  %v604_v35 = vadd.f32 %v603_v25, %v591_v34 }
  0xad   :  { %v617_v36 = vadd.f32 %v616_v26, %v604_v35 }
  0xb2   :  { %v605_v31 = vpop.f32.mrf.mxu2 }
  0xb3   :  { %v618_v32 = vpop.f32.mrf.mxu3 }
  0xc2   :  { %v629_v37 = vpop.f32.mrf.mxu0 }
  0xc3   :  { %v642_v38 = vpop.f32.mrf.mxu1  ;;  %v630_v39 = vadd.f32 %v629_v37, %v617_v36 }
  0xc5   :  { %v643_v40 = vadd.f32 %v642_v38, %v630_v39 }
  0xca   :  { %v655_v41 = vpop.f32.mrf.mxu2  ;;  %v631_v44 = vpop.f32.mrf.mxu0 }
  0xcb   :  { %v668_v42 = vpop.f32.mrf.mxu3  ;;  %v656_v43 = vadd.f32 %v655_v41, %v643_v40  ;;  %v644_v45 = vpop.f32.mrf.mxu1 }
  0xcd   :  { %v669_v46 = vadd.f32 %v668_v42, %v656_v43 }
  0xcf   :  { %v672_v47 = vmax.f32 %v669_v46, 0.0 }
  0xd1   :  { %v673_v48 = vpack.c.bf16 %v672_v47, %v672_v47 }
  0xd2   :  { %v657_v49 = vpop.f32.mrf.mxu2 }
  0xd3   :  { %v670_v50 = vpop.f32.mrf.mxu3  ;;  %750 = vmatmul.bf16.vlgmr.msra.gmra.mxu0 %v673_v48 }
 0x150   :  { %v751_v52 = vpop.f32.mrf.mxu0 }
 0x151   :  { %v752_v53 = vadd.f32 %v1125_v51, %v751_v52 }
 0x153   :  { %755 = vst [vmem:[%s1250_s5] sm:$0xff] %v752_v53 }
 0x158   :  { %v753_v54 = vpop.f32.mrf.mxu0 }
 0x159   :  { %760 = vsyncpa [#allocation3], 1 }

</bundles_post_ra>
